<compile_context>
chip_gen: v6e
topology: v6e:2x2x1
jax: 0.10.0
libtpu: 0.0.40
codegen_flags: <defaults>
</compile_context>

<pallas_src>
import functools

import jax
import jax.numpy as jnp
from jax.experimental import pallas as pl
from jax.experimental.pallas import tpu as pltpu


def _dropout_sampler_kernel(x_ref, rand_ref, w1_ref, b1_ref, wp_ref, bp_ref,
                            out_ref, *, dropout_rate):
    """One batch tile of the DropoutSampler forward.

    x_ref    : (TB, F)  bf16   activation tile
    rand_ref : (TB, F)  f32    uniform [0,1) randoms for the dropout mask
    w1_ref   : (F, F)   bf16   self.linear weight, pre-transposed to (in, out)
    b1_ref   : (1, F)   f32    self.linear bias
    wp_ref   : (F, OP)  bf16   self.predict weight, transposed + padded to OP>=128 lanes
    bp_ref   : (1, OP)  f32    self.predict bias, lane-padded
    out_ref  : (TB, OP) f32
    """
    w1 = w1_ref[...]
    b1 = b1_ref[...]

    # h = relu(x @ W1 + b1)    -- MXU bf16 operands, f32 accumulate
    h = jnp.dot(x_ref[...], w1, preferred_element_type=jnp.float32) + b1
    h = jnp.maximum(h, 0.0)

    # dropout(p), training=True semantics: keep w.p. (1-p), scale kept by 1/(1-p)
    if dropout_rate > 0.0:
        keep = rand_ref[...] >= jnp.float32(dropout_rate)
        scale = jnp.float32(1.0 / (1.0 - dropout_rate))
        h = jnp.where(keep, h * scale, 0.0)

    # h2 = relu(h @ W1 + b1)   -- same linear layer reused, as in the PyTorch forward
    h2 = jnp.dot(h.astype(w1.dtype), w1, preferred_element_type=jnp.float32) + b1
    h2 = jnp.maximum(h2, 0.0)

    # y = h2 @ Wp + bp         -- lane-dense (padded) output
    out_ref[...] = (
        jnp.dot(h2.astype(w1.dtype), wp_ref[...], preferred_element_type=jnp.float32)
        + bp_ref[...]
    )


def prepare_dropout_sampler_params(w1, b1, wp, bp, compute_dtype=jnp.bfloat16):
    """One-time parameter prep (hoisted out of the forward call):
    transpose to (in, out), cast MXU operands to bf16, pad the predict head to a
    lane-dense width (multiple of 128)."""
    num_features = w1.shape[1]
    num_outputs = wp.shape[0]
    o_pad = max(128, pl.cdiv(num_outputs, 128) * 128)

    w1_t = jnp.asarray(w1, jnp.float32).T.astype(compute_dtype)            # (F, F)
    b1_r = jnp.asarray(b1, jnp.float32).reshape(1, num_features)           # (1, F)
    wp_t = jnp.zeros((num_features, o_pad), compute_dtype)
    wp_t = wp_t.at[:, :num_outputs].set(
        jnp.asarray(wp, jnp.float32).T.astype(compute_dtype))              # (F, OP)
    bp_r = jnp.zeros((1, o_pad), jnp.float32)
    bp_r = bp_r.at[:, :num_outputs].set(jnp.asarray(bp, jnp.float32))      # (1, OP)

    return {"w1_t": w1_t, "b1": b1_r, "wp_t": wp_t, "bp": bp_r,
            "num_outputs": num_outputs}


def dropout_sampler_forward(params, x, key, dropout_rate=0.5, block_b=128):
    """x: (B, num_features) f32; key: jax PRNG key for the dropout mask."""
    w1_t, b1_r = params["w1_t"], params["b1"]
    wp_t, bp_r = params["wp_t"], params["bp"]
    num_outputs = params["num_outputs"]
    compute_dtype = w1_t.dtype

    B, F = x.shape
    o_pad = wp_t.shape[1]

    # 8-sublane-aligned batch tile; pad B up to a multiple of it.
    block_b = max(8, min(block_b, pl.cdiv(B, 8) * 8))
    b_pad = pl.cdiv(B, block_b) * block_b

    x_c = x.astype(compute_dtype)
    rand = jax.random.uniform(key, (B, F), jnp.float32)
    if b_pad != B:
        x_p = jnp.zeros((b_pad, F), compute_dtype).at[:B, :].set(x_c)
        rand_p = jnp.ones((b_pad, F), jnp.float32).at[:B, :].set(rand)
    else:
        x_p, rand_p = x_c, rand

    kernel = functools.partial(_dropout_sampler_kernel,
                               dropout_rate=float(dropout_rate))

    out = pl.pallas_call(
        kernel,
        out_shape=jax.ShapeDtypeStruct((b_pad, o_pad), jnp.float32),
        grid_spec=pltpu.PrefetchScalarGridSpec(
            num_scalar_prefetch=0,
            grid=(b_pad // block_b,),
            in_specs=[
                pl.BlockSpec((block_b, F), lambda i: (i, 0)),   # x tile
                pl.BlockSpec((block_b, F), lambda i: (i, 0)),   # dropout randoms tile
                pl.BlockSpec((F, F), lambda i: (0, 0)),         # W1 (VMEM-resident)
                pl.BlockSpec((1, F), lambda i: (0, 0)),         # b1
                pl.BlockSpec((F, o_pad), lambda i: (0, 0)),     # Wp (VMEM-resident)
                pl.BlockSpec((1, o_pad), lambda i: (0, 0)),     # bp
            ],
            out_specs=pl.BlockSpec((block_b, o_pad), lambda i: (i, 0)),
        ),
        compiler_params=pltpu.CompilerParams(
            dimension_semantics=("parallel",)),   # batch tiles shard across TCs (v7x)
    )(x_p, rand_p, w1_t, b1_r, wp_t, bp_r)

    return out[:B, :num_outputs]


if __name__ == "__main__":
    num_features = 32
    num_outputs = 4
    batch = 256          # batched up per perf review (amortizes launch cost, fills sublanes)
    dropout_rate = 0.5

    root = jax.random.PRNGKey(0)
    kx, kw1, kb1, kw2, kb2, kwp, kbp, kdrop = jax.random.split(root, 8)

    # Deterministic synthetic parameter init (PyTorch-style uniform bounds).
    bound = 1.0 / (num_features ** 0.5)
    w1 = jax.random.uniform(kw1, (num_features, num_features), jnp.float32, -bound, bound)
    b1 = jax.random.uniform(kb1, (num_features,), jnp.float32, -bound, bound)
    # linear2 exists in __init__ but is never used in forward; kept only for parity.
    w2 = jax.random.uniform(kw2, (num_features, num_features), jnp.float32, -bound, bound)
    b2 = jax.random.uniform(kb2, (num_features,), jnp.float32, -bound, bound)
    wp = jax.random.uniform(kwp, (num_outputs, num_features), jnp.float32, -bound, bound)
    bp = jax.random.uniform(kbp, (num_outputs,), jnp.float32, -bound, bound)

    x = jax.random.normal(kx, (batch, num_features), jnp.float32)

    params = prepare_dropout_sampler_params(w1, b1, wp, bp)
    y = dropout_sampler_forward(params, x, kdrop, dropout_rate=dropout_rate)
    y = jax.block_until_ready(y)

    assert y.shape == (batch, num_outputs)
    assert bool(jnp.all(jnp.isfinite(y)))

    # Pure-JAX reference with the identical dropout randoms (f32 throughout).
    rand = jax.random.uniform(kdrop, (batch, num_features), jnp.float32)
    h = jnp.maximum(x @ w1.T + b1, 0.0)
    h = jnp.where(rand >= dropout_rate, h / (1.0 - dropout_rate), 0.0)
    h = jnp.maximum(h @ w1.T + b1, 0.0)
    y_ref = h @ wp.T + bp
    assert bool(jnp.allclose(y, y_ref, rtol=5e-2, atol=5e-2)), (
        "max abs err = %f" % float(jnp.max(jnp.abs(y - y_ref))))

    print("KERNEL_OK")
</pallas_src>

<mosaic_0001>
module attributes {stable_mosaic.version = 11 : i64} {
  func.func @_dropout_sampler_kernel(%arg0: i32, %arg1: memref<128x32xbf16, #tpu.memory_space<vmem>>, %arg2: memref<128x32xf32, #tpu.memory_space<vmem>>, %arg3: memref<32x32xbf16, #tpu.memory_space<vmem>>, %arg4: memref<1x32xf32, #tpu.memory_space<vmem>>, %arg5: memref<32x128xbf16, #tpu.memory_space<vmem>>, %arg6: memref<1x128xf32, #tpu.memory_space<vmem>>, %arg7: memref<128x128xf32, #tpu.memory_space<vmem>>) attributes {dimension_semantics = [#tpu.dimension_semantics<parallel>], iteration_bounds = array<i64: 2>, scalar_prefetch = 0 : i64, scratch_operands = 0 : i64, tpu.core_type = #tpu.core_type<tc>, window_params = [{transform_indices = @transform_0, window_bounds = array<i64: 128, 32>}, {transform_indices = @transform_1, window_bounds = array<i64: 128, 32>}, {pipeline_mode = #tpu.pipeline_mode<synchronous>, transform_indices = @transform_2, window_bounds = array<i64: 32, 32>}, {pipeline_mode = #tpu.pipeline_mode<synchronous>, transform_indices = @transform_3, window_bounds = array<i64: 1, 32>}, {pipeline_mode = #tpu.pipeline_mode<synchronous>, transform_indices = @transform_4, window_bounds = array<i64: 32, 128>}, {pipeline_mode = #tpu.pipeline_mode<synchronous>, transform_indices = @transform_5, window_bounds = array<i64: 1, 128>}, {transform_indices = @transform_6, window_bounds = array<i64: 128, 128>}]} {
    %c0 = arith.constant 0 : index
    %c0_0 = arith.constant 0 : index
    %0 = vector.load %arg3[%c0, %c0_0] : memref<32x32xbf16, #tpu.memory_space<vmem>>, vector<32x32xbf16>
    %c0_1 = arith.constant 0 : index
    %c0_2 = arith.constant 0 : index
    %1 = vector.load %arg4[%c0_1, %c0_2] : memref<1x32xf32, #tpu.memory_space<vmem>>, vector<1x32xf32>
    %c0_3 = arith.constant 0 : index
    %c0_4 = arith.constant 0 : index
    %2 = vector.load %arg1[%c0_3, %c0_4] : memref<128x32xbf16, #tpu.memory_space<vmem>>, vector<128x32xbf16>
    %cst = arith.constant dense<0.000000e+00> : vector<128x32xf32>
    %3 = tpu.matmul %2, %0, %cst {dimension_numbers = #tpu.dot_dimension_numbers<[1], [0], [0], [1], [0, 0, 1, 1], [], []>} : vector<128x32xbf16>, vector<32x32xbf16>, vector<128x32xf32> -> vector<128x32xf32>
    %4 = vector.broadcast %1 : vector<1x32xf32> to vector<128x32xf32>
    %5 = arith.addf %3, %4 : vector<128x32xf32>
    %cst_5 = arith.constant 0.000000e+00 : f32
    %6 = vector.broadcast %cst_5 : f32 to vector<128x32xf32>
    %7 = arith.maximumf %5, %6 : vector<128x32xf32>
    %c0_6 = arith.constant 0 : index
    %c0_7 = arith.constant 0 : index
    %8 = vector.load %arg2[%c0_6, %c0_7] : memref<128x32xf32, #tpu.memory_space<vmem>>, vector<128x32xf32>
    %cst_8 = arith.constant 5.000000e-01 : f32
    %9 = vector.broadcast %cst_8 : f32 to vector<128x32xf32>
    %10 = arith.cmpf oge, %8, %9 : vector<128x32xf32>
    %cst_9 = arith.constant 2.000000e+00 : f32
    %11 = vector.broadcast %cst_9 : f32 to vector<128x32xf32>
    %12 = arith.mulf %7, %11 : vector<128x32xf32>
    %cst_10 = arith.constant 0.000000e+00 : f32
    %13 = vector.broadcast %cst_10 : f32 to vector<128x32xf32>
    %14 = arith.select %10, %12, %13 : vector<128x32xi1>, vector<128x32xf32>
    %15 = arith.truncf %14 : vector<128x32xf32> to vector<128x32xbf16>
    %cst_11 = arith.constant dense<0.000000e+00> : vector<128x32xf32>
    %16 = tpu.matmul %15, %0, %cst_11 {dimension_numbers = #tpu.dot_dimension_numbers<[1], [0], [0], [1], [0, 0, 1, 1], [], []>} : vector<128x32xbf16>, vector<32x32xbf16>, vector<128x32xf32> -> vector<128x32xf32>
    %17 = vector.broadcast %1 : vector<1x32xf32> to vector<128x32xf32>
    %18 = arith.addf %16, %17 : vector<128x32xf32>
    %cst_12 = arith.constant 0.000000e+00 : f32
    %19 = vector.broadcast %cst_12 : f32 to vector<128x32xf32>
    %20 = arith.maximumf %18, %19 : vector<128x32xf32>
    %21 = arith.truncf %20 : vector<128x32xf32> to vector<128x32xbf16>
    %c0_13 = arith.constant 0 : index
    %c0_14 = arith.constant 0 : index
    %22 = vector.load %arg5[%c0_13, %c0_14] : memref<32x128xbf16, #tpu.memory_space<vmem>>, vector<32x128xbf16>
    %cst_15 = arith.constant dense<0.000000e+00> : vector<128x128xf32>
    %23 = tpu.matmul %21, %22, %cst_15 {dimension_numbers = #tpu.dot_dimension_numbers<[1], [0], [0], [1], [0, 0, 1, 1], [], []>} : vector<128x32xbf16>, vector<32x128xbf16>, vector<128x128xf32> -> vector<128x128xf32>
    %c0_16 = arith.constant 0 : index
    %c0_17 = arith.constant 0 : index
    %24 = vector.load %arg6[%c0_16, %c0_17] : memref<1x128xf32, #tpu.memory_space<vmem>>, vector<1x128xf32>
    %25 = vector.broadcast %24 : vector<1x128xf32> to vector<128x128xf32>
    %26 = arith.addf %23, %25 : vector<128x128xf32>
    %c0_18 = arith.constant 0 : index
    %c0_19 = arith.constant 0 : index
    %27 = vector.load %arg7[%c0_18, %c0_19] : memref<128x128xf32, #tpu.memory_space<vmem>>, vector<128x128xf32>
    tpu.vector_store %arg7[%c0_18, %c0_19], %26 {strides = array<i32>} : memref<128x128xf32, #tpu.memory_space<vmem>>, vector<128x128xf32>,
    return
  }
  func.func @transform_0(%arg0: i32) -> (i32, i32) {
    %c0_i32 = arith.constant 0 : i32
    %c0_i32_0 = arith.constant 0 : i32
    return %arg0, %c0_i32 : i32, i32
  }
  func.func @transform_1(%arg0: i32) -> (i32, i32) {
    %c0_i32 = arith.constant 0 : i32
    %c0_i32_0 = arith.constant 0 : i32
    return %arg0, %c0_i32 : i32, i32
  }
  func.func @transform_2(%arg0: i32) -> (i32, i32) {
    %c0_i32 = arith.constant 0 : i32
    %c0_i32_0 = arith.constant 0 : i32
    %c0_i32_1 = arith.constant 0 : i32
    return %c0_i32, %c0_i32_0 : i32, i32
  }
  func.func @transform_3(%arg0: i32) -> (i32, i32) {
    %c0_i32 = arith.constant 0 : i32
    %c0_i32_0 = arith.constant 0 : i32
    %c0_i32_1 = arith.constant 0 : i32
    return %c0_i32, %c0_i32_0 : i32, i32
  }
  func.func @transform_4(%arg0: i32) -> (i32, i32) {
    %c0_i32 = arith.constant 0 : i32
    %c0_i32_0 = arith.constant 0 : i32
    %c0_i32_1 = arith.constant 0 : i32
    return %c0_i32, %c0_i32_0 : i32, i32
  }
  func.func @transform_5(%arg0: i32) -> (i32, i32) {
    %c0_i32 = arith.constant 0 : i32
    %c0_i32_0 = arith.constant 0 : i32
    %c0_i32_1 = arith.constant 0 : i32
    return %c0_i32, %c0_i32_0 : i32, i32
  }
  func.func @transform_6(%arg0: i32) -> (i32, i32) {
    %c0_i32 = arith.constant 0 : i32
    %c0_i32_0 = arith.constant 0 : i32
    return %arg0, %c0_i32 : i32, i32
  }
}

</mosaic_0001>

<bundles_post_ra>
// kernel: tpu_custom_call.1
= control target key start
LH: loop header
LB: loop body
LE: loop exit
PB: predicated region body
PF: predicated region fallthrough
CT: control target
= control target key end

     0   :  { %11 = vsyncpa [#allocation3], 0  ;;  %s1491_s0 = inlined_call_operand.vmem [shape: bf16[256,32], index: 0, kind: input, shape index: {}]   ;;  %s1492_s1 = inlined_call_operand.vmem [shape: f32[256,32], index: 1, kind: input, shape index: {}]   ;;  %s1493_s2 = inlined_call_operand.vmem [shape: bf16[32,32], index: 2, kind: input, shape index: {}]   ;;  %s1494_s3 = inlined_call_operand.vmem [shape: f32[1,32], index: 3, kind: input, shape index: {}]   ;;  %s1495_s4 = inlined_call_operand.vmem [shape: bf16[32,128], index: 4, kind: input, shape index: {}]   ;;  %s1496_s5 = inlined_call_operand.vmem [shape: f32[1,128], index: 5, kind: input, shape index: {}]   ;;  %s1497_s6 = inlined_call_operand.hbm [shape: f32[256,128], index: 6, kind: output, shape index: {}]  }
   0x1   :  { %13 = vsyncpa [#allocation3 + $0x1], 0  ;;  %s1258_s21 = smov 0   ;;  %s1260_s22 = smov 0  }
   0x2   :  { %s1262_s23 = smov 0   ;;  %s1264_s24 = smov 0  }
   0x3 LB: > { %s1279_s25 = sadd.s32 4294967295, %s1218_s24   ;;  %s958_s26 = sadd.s32 4294967294, %s1218_s24   ;;  %s1218_s24 = sphi %s1264_s24, %s1503_s24   ;;  %s1214_s23 = sphi %s1262_s23, %s1502_s23   ;;  %s1210_s22 = sphi %s1260_s22, %s1501_s22   ;;  %s1206_s21 = sphi %s1258_s21, %s1500_s21  }
   0x4   : > { %s1283_s27 = sadd.s32 1, %s1218_s24   ;;  %s162_s28 = sadd.s32 1, %s1214_s23 }
   0x5   : > { %s159_s29 = ssub.s32 %s1218_s24, %s1283_s27  ;;  %p172_p0 = scmp.ne.s32.totalorder %s1214_s23, %s1210_s22 }
   0x6   : > { %p160_p1 = scmp.eq.s32.totalorder %s159_s29, 0  ;;  %p173_p2 = scmp.eq.s32.totalorder %s1279_s25, 1 }
   0x7   : > { %p178_p3 = scmp.ne.s32.totalorder %s1210_s22, %s1206_s21  ;;  %p179_p4 = scmp.eq.s32.totalorder %s958_s26, 1 }
   0x8   : > { %s1294_s30 = scalar_select %p160_p1, %s1214_s23, %s162_s28  }
   0x9   : > { %p1296_p5 = por %p173_p2, %p172_p0  ;;  %p1300_p6 = por %p179_p4, %p178_p3 }
   0xa   : > { %p961_p7 = scmp.ge.s32.totalorder %s1218_s24, 1  ;;  %p227_p8 = scmp.lt.s32.totalorder %s1218_s24, 3 }
   0xc   : > { %p228_p9 = pnand %p961_p7, %p227_p8 }
   0xd   : > { %s963_s11 = sshll.u32 (!%p228_p9), %s1279_s25, 4  ;;  %s259_s13 = sand.u32 (!%p228_p9), 1, %s1210_s22  }
   0xe   : > { %231 = sbr.rel (%p228_p9) target bundleno = 682 (0x2aa), region = 44  ;;  %p263_p10 = scmp.lt.s32.totalorder (!%p228_p9), %s963_s11, 31 }
   0xf   : > { %s1010_s18 = sshll.u32 (!%p228_p9), %s1279_s25, 11  ;;  %s1451_s25 = scalar_lea.sflag (!%p228_p9), [#allocation3], %s259_s13 }
  0x10   : > { %s1220_s9 = smov (!%p228_p9), [#allocation2]  }
  0x13   : > { %v1146_v0 = vld [vmem:[%s1493_s2 + $0x8] sm:$0xff]   ;;  %v1147_v1 = vld [vmem:[%s1493_s2] sm:$0xff]   ;;  %s1505_s11 = smov (!%p263_p10, %s963_s11), 31  ;;  %vm355_vm0 = vcmask 261120  }
  0x14   : > { %1041 = vmatprep.subr.bf16.mxu0 %v1146_v0  ;;  %1101 = vmatprep.subr.bf16.mxu1 %v1146_v0  ;;  %s964_s14 = sshll.u32 %s1505_s11, 2  ;;  %v1156_v10 = vld [vmem:[%s1495_s4 + $0x8] sm:$0xff]   ;;  %v1333_v11 = vld [vmem:[%s1494_s3] ss:$0 sm:$0xff]  ;;  %s966_s28 = sshll.u32 %s1505_s11, 3 }
  0x15   : > { %1042 = vmatpush3.bf16.msra.mxu0 %v1146_v0  ;;  %1103 = vmatpush3.bf16.msra.mxu1 %v1146_v0  ;;  %s266_s17 = scalar_lea.vmem %s1491_s0, %s964_s14  ;;  %s1341_s10 = scalar_lea.vmem %s1492_s1, %s966_s28 }
  0x16   : > { %1043 = vmatprep.subr.bf16.mxu0 %v1147_v1  ;;  %1102 = vmatprep.subr.bf16.mxu1 %v1147_v1  ;;  %v1148_v2 = vld [vmem:[%s266_s17] sm:$0xff]   ;;  %v1149_v3 = vld [vmem:[%s266_s17 + $0x8] sm:$0xff]   ;;  %v1150_v4 = vld [vmem:[%s266_s17 + $0x10] sm:$0xff]   ;;  %s962_s14 = sshll.u32 %s259_s13, 7  ;;  %s1443_s28 = scalar_lea.hbm %s1497_s6, %s1010_s18 }
  0x17   : > { %1045 = vmatprep.mubr.msk.bf16.mxu0 %vm355_vm0, %v1148_v2  ;;  %v1152_v5 = vld [vmem:[%s266_s17 + $0x20] sm:$0xff]   ;;  %v1153_v6 = vld [vmem:[%s266_s17 + $0x28] sm:$0xff]   ;;  %v1154_v7 = vld [vmem:[%s266_s17 + $0x30] sm:$0xff]  }
  0x18   : > { %1053 = vmatprep.mubr.msk.bf16.mxu1 %vm355_vm0, %v1152_v5  ;;  %v1151_v8 = vld [vmem:[%s266_s17 + $0x18] sm:$0xff]   ;;  %v493_v24 = vld [vmem:[%s1341_s10] sm:$0xff]  ;;  %v494_v27 = vld [vmem:[%s1341_s10 + $0x8] sm:$0xff] }
  0x19   : > { %1044 = vmatpush3.bf16.msra.mxu0 %v1147_v1  ;;  %1104 = vmatpush3.bf16.msra.mxu1 %v1147_v1  ;;  %v1155_v9 = vld [vmem:[%s266_s17 + $0x38] sm:$0xff]   ;;  %v495_v28 = vld [vmem:[%s1341_s10 + $0x10] sm:$0xff]  ;;  %v501_v37 = vld [vmem:[%s1341_s10 + $0x40] sm:$0xff]  ;;  %vm509_vm2 = vcmp.ge.f32.partialorder %v493_v24, 0.5  ;;  %vm510_vm3 = vcmp.ge.f32.partialorder %v494_v27, 0.5  ;;  %s1422_s17 = scalar_lea.vmem [#allocation2], %s962_s14 }
  0x1a   : > { %1061 = vmatprep.subr.bf16.mxu1 %v1146_v0  ;;  %1081 = vmatprep.subr.bf16.mxu0 %v1156_v10  ;;  %v496_v20 = vld [vmem:[%s1341_s10 + $0x18] sm:$0xff]  ;;  %v1351_v35 = vld [vmem:[%s1341_s10 + $0x30] sm:$0xff]  ;;  %vm511_vm4 = vcmp.ge.f32.partialorder %v495_v28, 0.5  ;;  %vm517_vm7 = vcmp.ge.f32.partialorder %v501_v37, 0.5  ;;  %v502_v57 = vld [vmem:[%s1341_s10 + $0x48] sm:$0xff]  ;;  %s884_s19 = sshll.u32 %s1422_s17, 4  ;;  %s1445_s19 = int_to_ptr.vmem [resolvable:$true] %s884_s19 }
  0x1b   : > { %vm512_vm1 = vcmp.ge.f32.partialorder %v496_v20, 0.5  ;;  %v500_v36 = vld [vmem:[%s1341_s10 + $0x38] sm:$0xff]  ;;  %vm515_vm5 = vcmp.ge.f32.partialorder %v1351_v35, 0.5  ;;  %v497_v60 = vld [vmem:[%s1341_s10 + $0x20] sm:$0xff]  ;;  %vm518_vm8 = vcmp.ge.f32.partialorder %v502_v57, 0.5  ;;  %v503_v27 = vld [vmem:[%s1341_s10 + $0x50] sm:$0xff] }
  0x1c   : > { %1046 = vmatmul.mubr.msk.bf16.vlgmr.msra.gmra.mxu0 %vm355_vm0, %v1149_v3  ;;  %1054 = vmatmul.mubr.msk.bf16.vlgmr.msra.gmra.mxu1 %vm355_vm0, %v1153_v6  ;;  %vm516_vm6 = vcmp.ge.f32.partialorder %v500_v36, 0.5  ;;  %vm513_vm9 = vcmp.ge.f32.partialorder %v497_v60, 0.5  ;;  %vm519_vm13 = vcmp.ge.f32.partialorder %v503_v27, 0.5  ;;  %s1158_s29 = scalar_lea.vmem %s1445_s19, 2048 }
  0x1d   : > { %1049 = vmatprep.mubr.msk.bf16.mxu0 %vm355_vm0, %v1150_v4  ;;  %1057 = vmatprep.mubr.msk.bf16.mxu1 %vm355_vm0, %v1154_v7  ;;  %p1159_p11 = scmp.ne.s32.totalorder %s1445_s19, %s1158_s29 }
  0x1e   : > { %1062 = vmatpush3.bf16.msra.mxu1 %v1146_v0  ;;  %1082 = vmatpush3.bf16.msra.mxu0 %v1156_v10  ;;  %v498_v0 = vld [vmem:[%s1341_s10 + $0x28] sm:$0xff] }
  0x1f   : > { %1063 = vmatprep.subr.bf16.mxu1 %v1147_v1  ;;  %vm514_vm10 = vcmp.ge.f32.partialorder %v498_v0, 0.5  ;;  %p1160_p12 = pnand %p1159_p11, %p1296_p5 }
  0x21   : > { %p1161_p13 = pneg %p1160_p12 }
  0x22   : > { %1064 = vmatpush3.bf16.msra.mxu1 %v1147_v1 }
  0x24   : > { %1050 = vmatmul.mubr.msk.bf16.gmra.mxu0 %vm355_vm0, %v1151_v8  ;;  %1058 = vmatmul.mubr.msk.bf16.gmra.mxu1 %vm355_vm0, %v1155_v9 }
  0xdc   : > { %v1047_v12 = vpop.f32.mrf.mxu0  ;;  %v1055_v17 = vpop.f32.mrf.mxu1 }
  0xdd   : > { %v423_v13 = vadd.f32 %v1047_v12, %v1333_v11  ;;  %v455_v1 = vadd.f32 %v1055_v17, %v1333_v11 }
  0xde   : > { %v414_v14 = vpop.f32.mrf.mxu0  ;;  %v446_v23 = vpop.f32.mrf.mxu1 }
  0xdf   : > { %v415_v15 = vadd.f32 %v1333_v11, %v414_v14  ;;  %v479_v21 = vmax.f32 %v423_v13, 0.0  ;;  %v447_v30 = vadd.f32 %v1333_v11, %v446_v23 }
  0xe0   : > { %v1048_v16 = vpop.f32.mrf.mxu0  ;;  %v1056_v31 = vpop.f32.mrf.mxu1 }
  0xe1   : > { %v477_v18 = vmax.f32 %v415_v15, 0.0  ;;  %v426_v19 = vadd.f32 %v1048_v16, %v1333_v11  ;;  %v527_v38 = vmul.f32 2.0, %v479_v21  ;;  %v485_v44 = vmax.f32 %v447_v30, 0.0  ;;  %v505_v16 = vld [vmem:[%s1341_s10 + $0x60] sm:$0xff] }
  0xe2   : > { %v417_v22 = vpop.f32.mrf.mxu0  ;;  %v449_v41 = vpop.f32.mrf.mxu1  ;;  %v458_v2 = vadd.f32 %v1056_v31, %v1333_v11  ;;  %vm521_vm11 = vcmp.ge.f32.partialorder %v505_v16, 0.5 }
  0xe3   : > { %v480_v25 = vmax.f32 %v426_v19, 0.0  ;;  %v418_v26 = vadd.f32 %v1333_v11, %v417_v22  ;;  %v525_v32 = vmul.f32 2.0, %v477_v18  ;;  %v543_v52 = vsel %vm511_vm4, %v527_v38, 0.0  ;;  %v506_v22 = vld [vmem:[%s1341_s10 + $0x68] sm:$0xff] }
  0xe4   : > { %v1051_v29 = vpop.f32.mrf.mxu0  ;;  %v1059_v47 = vpop.f32.mrf.mxu1  ;;  %v450_v56 = vadd.f32 %v1333_v11, %v449_v41  ;;  %v533_v62 = vmul.f32 2.0, %v485_v44  ;;  %v487_v18 = vmax.f32 %v455_v1, 0.0  ;;  %v488_v20 = vmax.f32 %v458_v2, 0.0  ;;  %v507_v44 = vld [vmem:[%s1341_s10 + $0x70] sm:$0xff] }
  0xe5   : > { %v528_v33 = vmul.f32 2.0, %v480_v25  ;;  %v478_v34 = vmax.f32 %v418_v26, 0.0  ;;  %v439_v39 = vadd.f32 %v1051_v29, %v1333_v11  ;;  %v541_v48 = vsel %vm509_vm2, %v525_v32, 0.0  ;;  %v504_v29 = vld [vmem:[%s1341_s10 + $0x58] sm:$0xff] }
  0xe6   : > { %v430_v40 = vpop.f32.mrf.mxu0  ;;  %v462_v58 = vpop.f32.mrf.mxu1  ;;  %v486_v3 = vmax.f32 %v450_v56, 0.0  ;;  %v549_v13 = vsel %vm517_vm7, %v533_v62, 0.0  ;;  %vm522_vm12 = vcmp.ge.f32.partialorder %v506_v22, 0.5  ;;  %v536_v36 = vmul.f32 2.0, %v488_v20 }
  0xe7   : > { %v526_v42 = vmul.f32 2.0, %v478_v34  ;;  %v431_v43 = vadd.f32 %v1333_v11, %v430_v40  ;;  %v544_v45 = vsel %vm512_vm1, %v528_v33, 0.0  ;;  %v483_v54 = vmax.f32 %v439_v39, 0.0 }
  0xe8   : > { %v1052_v46 = vpop.f32.mrf.mxu0  ;;  %v558_v59 = vpack.c.bf16 %v544_v45, %v543_v52  ;;  %v463_v4 = vadd.f32 %v1333_v11, %v462_v58  ;;  %v1060_v5 = vpop.f32.mrf.mxu1  ;;  %v534_v10 = vmul.f32 2.0, %v486_v3  ;;  %v535_v34 = vmul.f32 2.0, %v487_v18  ;;  %v508_v45 = vld [vmem:[%s1341_s10 + $0x78] sm:$0xff]  ;;  %s1162_s10 = sshll.u32 %s1220_s9, 4  ;;  %s1163_s10 = int_to_ptr.vmem [resolvable:$false] %s1162_s10 }
  0xe9   : > { %v542_v49 = vsel %vm510_vm3, %v526_v42, 0.0  ;;  %v481_v50 = vmax.f32 %v431_v43, 0.0  ;;  %v442_v51 = vadd.f32 %v1052_v46, %v1333_v11  ;;  %v531_v9 = vmul.f32 2.0, %v483_v54  ;;  %s1164_s11 = scalar_lea.vmem %s1163_s10, 4096  ;;  %p1165_p0 = scmp.lt.s32.totalorder %s1445_s19, %s1163_s10 }
  0xea   : > { %v557_v53 = vpack.c.bf16 %v542_v49, %v541_v48  ;;  %v433_v55 = vpop.f32.mrf.mxu0  ;;  %v465_v12 = vpop.f32.mrf.mxu1  ;;  %v489_v15 = vmax.f32 %v463_v4, 0.0  ;;  %v550_v21 = vsel %vm518_vm8, %v534_v10, 0.0  ;;  %v471_v37 = vadd.f32 %v1059_v47, %v1333_v11  ;;  %p1166_p1 = scmp.lt.s32.totalorder %s1164_s11, %s1158_s29 }
  0xeb   : > { %v484_v61 = vmax.f32 %v442_v51, 0.0  ;;  %v434_v63 = vadd.f32 %v1333_v11, %v433_v55  ;;  %v529_v6 = vmul.f32 2.0, %v481_v50  ;;  %v466_v17 = vadd.f32 %v1333_v11, %v465_v12 }
  0xec   : > { %1065 = vmatprep.mubr.msk.bf16.mxu1 %vm355_vm0, %v557_v53  ;;  %v547_v26 = vsel %vm515_vm5, %v531_v9, 0.0  ;;  %v561_v30 = vpack.c.bf16 %v550_v21, %v549_v13  ;;  %v537_v32 = vmul.f32 2.0, %v489_v15  ;;  %v474_v38 = vadd.f32 %v1060_v5, %v1333_v11  ;;  %v1157_v53 = vld [vmem:[%s1495_s4] sm:$0xff]   ;;  %p1167_p2 = por %p1166_p1, %p1165_p0 }
  0xed   : > { %v532_v7 = vmul.f32 2.0, %v484_v61  ;;  %v482_v8 = vmax.f32 %v434_v63, 0.0  ;;  %1066 = vmatmul.mubr.msk.bf16.vlgmr.msra.gmra.mxu1 %vm355_vm0, %v558_v59  ;;  %v545_v23 = vsel %vm513_vm9, %v529_v6, 0.0  ;;  %v490_v25 = vmax.f32 %v466_v17, 0.0  ;;  %1083 = vmatprep.subr.bf16.mxu0 %v1157_v53 }
  0xee   : > { %vm520_vm14 = vcmp.ge.f32.partialorder %v504_v29, 0.5  ;;  %v553_v35 = vsel %vm521_vm11, %v537_v32, 0.0  ;;  %v551_v40 = vsel %vm519_vm13, %v535_v34, 0.0  ;;  %v491_v42 = vmax.f32 %v471_v37, 0.0  ;;  %1084 = vmatpush3.bf16.msra.mxu0 %v1157_v53  ;;  %p1168_p3 = pnand %p1167_p2, %p1161_p13 }
  0xef   : > { %v530_v14 = vmul.f32 2.0, %v482_v8  ;;  %v548_v19 = vsel %vm516_vm6, %v532_v7, 0.0  ;;  %v538_v33 = vmul.f32 2.0, %v490_v25  ;;  %v552_v41 = vsel %vm520_vm14, %v536_v36, 0.0 }
  0xf0   : > { %v560_v31 = vpack.c.bf16 %v548_v19, %v547_v26  ;;  %v492_v43 = vmax.f32 %v474_v38, 0.0  ;;  %v562_v47 = vpack.c.bf16 %v552_v41, %v551_v40  ;;  %v539_v48 = vmul.f32 2.0, %v491_v42 }
  0xf1   : > { %v546_v24 = vsel %vm514_vm10, %v530_v14, 0.0  ;;  %v554_v39 = vsel %vm522_vm12, %v538_v33, 0.0  ;;  %vm523_vm15 = vcmp.ge.f32.partialorder %v507_v44, 0.5  ;;  %vm524_vm1 = vcmp.ge.f32.partialorder %v508_v45, 0.5 }
  0xf2   : > { %v559_v28 = vpack.c.bf16 %v546_v24, %v545_v23  ;;  %v563_v46 = vpack.c.bf16 %v554_v39, %v553_v35  ;;  %v540_v49 = vmul.f32 2.0, %v492_v43  ;;  %v555_v50 = vsel %vm523_vm15, %v539_v48, 0.0 }
  0xf4   : > { %1069 = vmatprep.mubr.msk.bf16.mxu1 %vm355_vm0, %v559_v28  ;;  %v556_v51 = vsel %vm524_vm1, %v540_v49, 0.0 }
  0xf5   : > { %1070 = vmatmul.mubr.msk.bf16.gmra.mxu1 %vm355_vm0, %v560_v31  ;;  %v564_v52 = vpack.c.bf16 %v556_v51, %v555_v50 }
  0xf6   : > { %1073 = vmatprep.mubr.msk.bf16.mxu1 %vm355_vm0, %v561_v30 }
  0xfd   : > { %1074 = vmatmul.mubr.msk.bf16.gmra.mxu1 %vm355_vm0, %v562_v47  ;;  %v994_v47 = vld [vmem:[%s1496_s5] ss:$0 sm:$0xff] }
  0xfe   : > { %1077 = vmatprep.mubr.msk.bf16.mxu1 %vm355_vm0, %v563_v46 }
 0x105   : > { %1078 = vmatmul.mubr.msk.bf16.gmra.mxu1 %vm355_vm0, %v564_v52 }
 0x1ad   : > { %v1067_v54 = vpop.f32.mrf.mxu1 }
 0x1ae   : > { %v632_v59 = vadd.f32 %v1067_v54, %v1333_v11 }
 0x1af   : > { %v623_v55 = vpop.f32.mrf.mxu1 }
 0x1b0   : > { %v624_v57 = vadd.f32 %v1333_v11, %v623_v55  ;;  %v688_v2 = vmax.f32 %v632_v59, 0.0 }
 0x1b1   : > { %v1068_v56 = vpop.f32.mrf.mxu1 }
 0x1b2   : > { %v635_v58 = vadd.f32 %v1068_v56, %v1333_v11  ;;  %v686_v0 = vmax.f32 %v624_v57, 0.0 }
 0x1b3   : > { %v626_v60 = vpop.f32.mrf.mxu1 }
 0x1b4   : > { %v627_v61 = vadd.f32 %v1333_v11, %v626_v60  ;;  %v689_v62 = vmax.f32 %v635_v58, 0.0 }
 0x1b5   : > { %v1071_v63 = vpop.f32.mrf.mxu1 }
 0x1b6   : > { %v687_v1 = vmax.f32 %v627_v61, 0.0  ;;  %v703_v5 = vpack.c.bf16 %v689_v62, %v688_v2  ;;  %v648_v9 = vadd.f32 %v1071_v63, %v1333_v11 }
 0x1b7   : > { %v639_v3 = vpop.f32.mrf.mxu1 }
 0x1b8   : > { %v702_v4 = vpack.c.bf16 %v687_v1, %v686_v0  ;;  %v640_v7 = vadd.f32 %v1333_v11, %v639_v3  ;;  %v692_v17 = vmax.f32 %v648_v9, 0.0 }
 0x1b9   : > { %v1072_v6 = vpop.f32.mrf.mxu1 }
 0x1ba   : > { %v651_v8 = vadd.f32 %v1072_v6, %v1333_v11  ;;  %1085 = vmatprep.mubr.msk.bf16.mxu0 %vm355_vm0, %v702_v4  ;;  %v690_v15 = vmax.f32 %v640_v7, 0.0 }
 0x1bb   : > { %v642_v10 = vpop.f32.mrf.mxu1  ;;  %1086 = vmatmul.mubr.msk.bf16.vlgmr.msra.gmra.mxu0 %vm355_vm0, %v703_v5 }
 0x1bc   : > { %v643_v12 = vadd.f32 %v1333_v11, %v642_v10  ;;  %v693_v13 = vmax.f32 %v651_v8, 0.0 }
 0x1bd   : > { %v1075_v14 = vpop.f32.mrf.mxu1 }
 0x1be   : > { %v691_v16 = vmax.f32 %v643_v12, 0.0  ;;  %v705_v20 = vpack.c.bf16 %v693_v13, %v692_v17  ;;  %v664_v24 = vadd.f32 %v1075_v14, %v1333_v11 }
 0x1bf   : > { %v655_v18 = vpop.f32.mrf.mxu1 }
 0x1c0   : > { %v704_v19 = vpack.c.bf16 %v691_v16, %v690_v15  ;;  %v656_v22 = vadd.f32 %v1333_v11, %v655_v18  ;;  %v696_v31 = vmax.f32 %v664_v24, 0.0 }
 0x1c1   : > { %v1076_v21 = vpop.f32.mrf.mxu1 }
 0x1c2   : > { %v667_v23 = vadd.f32 %v1076_v21, %v1333_v11  ;;  %1089 = vmatprep.mubr.msk.bf16.mxu0 %vm355_vm0, %v704_v19  ;;  %v694_v29 = vmax.f32 %v656_v22, 0.0 }
 0x1c3   : > { %v658_v25 = vpop.f32.mrf.mxu1  ;;  %1090 = vmatmul.mubr.msk.bf16.gmra.mxu0 %vm355_vm0, %v705_v20 }
 0x1c4   : > { %v659_v26 = vadd.f32 %v1333_v11, %v658_v25  ;;  %v697_v27 = vmax.f32 %v667_v23, 0.0 }
 0x1c5   : > { %v1079_v28 = vpop.f32.mrf.mxu1 }
 0x1c6   : > { %v695_v30 = vmax.f32 %v659_v26, 0.0  ;;  %v707_v34 = vpack.c.bf16 %v697_v27, %v696_v31  ;;  %v680_v35 = vadd.f32 %v1079_v28, %v1333_v11 }
 0x1c7   : > { %v671_v32 = vpop.f32.mrf.mxu1 }
 0x1c8   : > { %v706_v33 = vpack.c.bf16 %v695_v30, %v694_v29  ;;  %v672_v37 = vadd.f32 %v1333_v11, %v671_v32  ;;  %v700_v44 = vmax.f32 %v680_v35, 0.0 }
 0x1c9   : > { %v1080_v36 = vpop.f32.mrf.mxu1 }
 0x1ca   : > { %v683_v38 = vadd.f32 %v1080_v36, %v1333_v11  ;;  %1093 = vmatprep.mubr.msk.bf16.mxu0 %vm355_vm0, %v706_v33  ;;  %v698_v42 = vmax.f32 %v672_v37, 0.0 }
 0x1cb   : > { %v674_v39 = vpop.f32.mrf.mxu1  ;;  %1094 = vmatmul.mubr.msk.bf16.gmra.mxu0 %vm355_vm0, %v707_v34 }
 0x1cc   : > { %v675_v40 = vadd.f32 %v1333_v11, %v674_v39  ;;  %v701_v41 = vmax.f32 %v683_v38, 0.0 }
 0x1ce   : > { %v699_v43 = vmax.f32 %v675_v40, 0.0  ;;  %v709_v46 = vpack.c.bf16 %v701_v41, %v700_v44 }
 0x1d0   : > { %v708_v45 = vpack.c.bf16 %v699_v43, %v698_v42 }
 0x1d2   : > { %1097 = vmatprep.mubr.msk.bf16.mxu0 %vm355_vm0, %v708_v45 }
 0x1d3   : > { %1098 = vmatmul.mubr.msk.bf16.gmra.mxu0 %vm355_vm0, %v709_v46 }
 0x27b   : > { %v1087_v48 = vpop.f32.mrf.mxu0 }
 0x27c   : > { %v800_v49 = vadd.f32 %v1087_v48, %v994_v47 }
 0x27d   : > { %v791_v11 = vpop.f32.mrf.mxu0 }
 0x27e   : > { %856 = vst [vmem:[%s1422_s17 + $0x10] sm:$0xff] %v800_v49  ;;  %v792_v50 = vadd.f32 %v994_v47, %v791_v11 }
 0x27f   : > { %v1088_v51 = vpop.f32.mrf.mxu0 }
 0x280   : > { %854 = vst [vmem:[%s1422_s17] sm:$0xff] %v792_v50  ;;  %v803_v52 = vadd.f32 %v1088_v51, %v994_v47 }
 0x281   : > { %v794_v53 = vpop.f32.mrf.mxu0 }
 0x282   : > { %857 = vst [vmem:[%s1422_s17 + $0x18] sm:$0xff] %v803_v52  ;;  %v795_v54 = vadd.f32 %v994_v47, %v794_v53 }
 0x283   : > { %v1091_v55 = vpop.f32.mrf.mxu0 }
 0x284   : > { %855 = vst [vmem:[%s1422_s17 + $0x8] sm:$0xff] %v795_v54  ;;  %v816_v56 = vadd.f32 %v1091_v55, %v994_v47 }
 0x285   : > { %v807_v57 = vpop.f32.mrf.mxu0 }
 0x286   : > { %860 = vst [vmem:[%s1422_s17 + $0x30] sm:$0xff] %v816_v56  ;;  %v808_v58 = vadd.f32 %v994_v47, %v807_v57 }
 0x287   : > { %v1092_v59 = vpop.f32.mrf.mxu0 }
 0x288   : > { %858 = vst [vmem:[%s1422_s17 + $0x20] sm:$0xff] %v808_v58  ;;  %v819_v60 = vadd.f32 %v1092_v59, %v994_v47 }
 0x289   : > { %v810_v61 = vpop.f32.mrf.mxu0 }
 0x28a   : > { %861 = vst [vmem:[%s1422_s17 + $0x38] sm:$0xff] %v819_v60  ;;  %v811_v62 = vadd.f32 %v994_v47, %v810_v61 }
 0x28b   : > { %v1095_v63 = vpop.f32.mrf.mxu0 }
 0x28c   : > { %859 = vst [vmem:[%s1422_s17 + $0x28] sm:$0xff] %v811_v62  ;;  %v832_v0 = vadd.f32 %v1095_v63, %v994_v47 }
 0x28d   : > { %v823_v1 = vpop.f32.mrf.mxu0 }
 0x28e   : > { %864 = vst [vmem:[%s1422_s17 + $0x50] sm:$0xff] %v832_v0  ;;  %v824_v2 = vadd.f32 %v994_v47, %v823_v1 }
 0x28f   : > { %v1096_v3 = vpop.f32.mrf.mxu0 }
 0x290   : > { %862 = vst [vmem:[%s1422_s17 + $0x40] sm:$0xff] %v824_v2  ;;  %v835_v4 = vadd.f32 %v1096_v3, %v994_v47 }
 0x291   : > { %v826_v5 = vpop.f32.mrf.mxu0 }
 0x292   : > { %865 = vst [vmem:[%s1422_s17 + $0x58] sm:$0xff] %v835_v4  ;;  %v827_v6 = vadd.f32 %v994_v47, %v826_v5 }
 0x293   : > { %v1099_v7 = vpop.f32.mrf.mxu0 }
 0x294   : > { %863 = vst [vmem:[%s1422_s17 + $0x48] sm:$0xff] %v827_v6  ;;  %v848_v8 = vadd.f32 %v1099_v7, %v994_v47 }
 0x295   : > { %v839_v9 = vpop.f32.mrf.mxu0 }
 0x296   : > { %868 = vst [vmem:[%s1422_s17 + $0x70] sm:$0xff] %v848_v8  ;;  %v840_v10 = vadd.f32 %v994_v47, %v839_v9 }
 0x297   : > { %v1100_v12 = vpop.f32.mrf.mxu0 }
 0x298   : > { %866 = vst [vmem:[%s1422_s17 + $0x60] sm:$0xff] %v840_v10  ;;  %v851_v13 = vadd.f32 %v1100_v12, %v994_v47 }
 0x299   : > { %v842_v14 = vpop.f32.mrf.mxu0 }
 0x29a   : > { %869 = vst [vmem:[%s1422_s17 + $0x78] sm:$0xff] %v851_v13  ;;  %v843_v15 = vadd.f32 %v994_v47, %v842_v14 }
 0x29c   : > { %867 = vst [vmem:[%s1422_s17 + $0x68] sm:$0xff] %v843_v15 }
 0x29d   : > { %1171 = shalt.err (!%p1168_p3)
}
 0x29e   : > { %s1172_s12 = scalar_lea.hbm %s1443_s28, 2048  ;;  %s1176_s15 = scalar_lea.hbm %s1497_s6, 4096 }
 0x29f   : > { %p1173_p4 = scmp.ne.s32.totalorder %s1443_s28, %s1172_s12  ;;  %p1177_p9 = scmp.lt.s32.totalorder %s1443_s28, %s1497_s6 }
 0x2a0   : > { %p1178_p10 = scmp.lt.s32.totalorder %s1176_s15, %s1172_s12 }
 0x2a1   : > { %p1174_p7 = pnand %p1173_p4, %p1296_p5 }
 0x2a2   : > { %p1179_p11 = por %p1178_p10, %p1177_p9 }
 0x2a3   : > { %p1175_p8 = pneg %p1174_p7 }
 0x2a5   : > { %p1180_p12 = pnand %p1179_p11, %p1175_p8 }
 0x2a7   : > { %1183 = shalt.err (!%p1180_p12)
}
 0x2a8   : > { %s1221_s18 = smov 128   ;;  %s1222_s20 = smov 8  }
 0x2a9   : > { %1105 = dma.vmem_to_hbm [thread:$0]  (%p1296_p5), %s1445_s19, 2048, %s1443_s28, %s1451_s25, %s1221_s18, %s1221_s18, %s1222_s20  }
 0x2aa PF: > { %p1111_p13 = scmp.ge.s32.totalorder %s1218_s24, 2  ;;  %s899_s26 = sand.u32 1, %s1206_s21  }
 0x2ab   : > { %s900_s29 = scalar_lea.sflag [#allocation3], %s899_s26 }
 0x2ac   : > { %p1108_p0 = pnand %p1111_p13, %p1300_p6 }
 0x2ae   : > { %p1109_p1 = pneg %p1108_p0 }
 0x2b0   : > { %1201 = dma.done.wait (%p1109_p1), %s900_s29, 2048  }
 0x2b1   : > { %1203 = vsyncadd (%p1109_p1), %s900_s29, 4294965248  ;;  %p16_p2 = scmp.ge.s32.totalorder %s1283_s27, 4   ;;  %s1500_s21 = smov %s1210_s22 }
 0x2b2   : > { %s1501_s22 = smov %s1214_s23  ;;  %s1502_s23 = smov %s1294_s30 }
 0x2b3   : > { %s1503_s24 = smov %s1283_s27  ;;  %18 = sbr.rel (!%p16_p2) target bundleno = 3 (0x3), region = 82 }
 0x2b8   :  { %905 = vsyncpa [#allocation3], 1 }
 0x2b9   :  { %907 = vsyncpa [#allocation3 + $0x1], 1 }

</bundles_post_ra>
